<compile_context>
chip_gen: v5e
topology: v5e:2x2
jax: 0.10.0
libtpu: 0.0.40
codegen_flags: <defaults>
</compile_context>

<pallas_src>
import jax
import jax.numpy as jnp
from jax.experimental import pallas as pl
from jax.experimental.pallas import tpu as pltpu


def _round_up(x, m):
    return ((x + m - 1) // m) * m


def _sobel_kernel(x_ref, ry_ref, rx_ref, my_ref, mx_ref, bias_ref, out_ref):
    # x_ref:    (1, 3, 3*TH, 3*TWo) f32 -- contiguous NCHW input window
    # ry_ref:   (TH, 3*TH)   f32 -- row combine+downsample, filtery ([-1,0,1])
    # rx_ref:   (TH, 3*TH)   f32 -- row combine+downsample, filterx ([1,2,1])
    # my_ref:   (3*TWo, TWo) f32 -- col combine+downsample, filtery ([1,2,1])
    # mx_ref:   (3*TWo, TWo) f32 -- col combine+downsample, filterx ([-1,0,1])
    # bias_ref: (2,)         f32 in SMEM: [ybias, xbias]
    # out_ref:  (1, TH, TWo) f32 -- sqrt(o1^2 + o2^2)

    # Both Sobel filters are broadcast identically across the 3 input
    # channels, so sum the channels first (lane/sublane-dense VPU adds).
    xs = x_ref[0, 0] + x_ref[0, 1] + x_ref[0, 2]                  # (3TH, 3TWo)

    # Separable filters as two small band matmuls per filter (all MXU).
    ty = jnp.dot(ry_ref[...], xs, preferred_element_type=jnp.float32)   # (TH, 3TWo)
    tx = jnp.dot(rx_ref[...], xs, preferred_element_type=jnp.float32)   # (TH, 3TWo)
    o1 = jnp.dot(ty, my_ref[...], preferred_element_type=jnp.float32) + bias_ref[0]
    o2 = jnp.dot(tx, mx_ref[...], preferred_element_type=jnp.float32) + bias_ref[1]

    # o1^2 + o2^2 >= 0 so torch's abs is a no-op; sqrt runs on the EUP slot.
    out_ref[0] = jnp.sqrt(o1 * o1 + o2 * o2)


def _make_band_matrices(TH, TWo):
    """Band matrices implementing the separable stride-3 3x3 filters.

    fy = outer([-1,0,1], [1,2,1]),  fx = outer([1,2,1], [-1,0,1]).
    R[i, 3*i + kh] = u[kh]   (row combine + row downsample, left-multiply)
    M[3*j + kw, j] = v[kw]   (col combine + col downsample, right-multiply)
    """
    uy = jnp.array([-1.0, 0.0, 1.0], jnp.float32)
    vy = jnp.array([1.0, 2.0, 1.0], jnp.float32)
    ux = jnp.array([1.0, 2.0, 1.0], jnp.float32)
    vx = jnp.array([-1.0, 0.0, 1.0], jnp.float32)
    eye_h = jnp.eye(TH, dtype=jnp.float32)
    eye_w = jnp.eye(TWo, dtype=jnp.float32)
    ry = jnp.kron(eye_h, uy[None, :])      # (TH, 3*TH)
    rx = jnp.kron(eye_h, ux[None, :])      # (TH, 3*TH)
    my = jnp.kron(eye_w, vy[:, None])      # (3*TWo, TWo)
    mx = jnp.kron(eye_w, vx[:, None])      # (3*TWo, TWo)
    return ry, rx, my, mx


def _tpu_kind():
    try:
        return jax.devices()[0].device_kind.lower()
    except Exception:
        return ""


def _pick_tiles(N, Ho, Wo):
    """Generation-aware (TH, TWo, vmem_limit_bytes)."""
    kind = _tpu_kind()
    is_v7 = "v7" in kind
    is_v6 = "v6" in kind
    # Output-column tile: lane-dense (multiple of 128). 256 matches the
    # 256-wide MXU on v6e/v7x, 128 matches v5e's 128-wide MXU.
    TWo = min(256 if (is_v6 or is_v7) else 128, _round_up(Wo, 128))
    # Output-row tile: the row-combine matmul costs ~36*TH f32 MXU flops per
    # output element, so keep TH moderate; v7x gets a smaller TH because its
    # much higher HBM bandwidth makes the kernel compute-sensitive sooner.
    TH = min(64 if is_v7 else 128, _round_up(Ho, 8))
    # Expose >= 2 grid iterations along parallel axes so both v7x TensorCores
    # get work (harmless on single-TC v5e/v6e).
    if N * pl.cdiv(Ho, TH) * pl.cdiv(Wo, TWo) < 2 and Ho > 8:
        TH = _round_up(pl.cdiv(Ho, 2), 8)
    # Physical VMEM: 128 MiB on v5e/v6e, 64 MiB on v7x.
    vmem_limit = (48 << 20) if is_v7 else (64 << 20)
    return TH, TWo, vmem_limit


def sobel_forward(x, bias):
    """x: (N, 3, H, W) NCHW; bias = [ybias, xbias] (2,) f32.
    Returns (N, 3, H//3, W//3), matching PyTorch SOBEL.forward."""
    N, C, H, W = x.shape
    assert C == 3, "SOBEL expects 3 input channels"
    Ho, Wo = H // 3, W // 3
    assert Ho > 0 and Wo > 0, "spatial dims must be >= 3"

    TH, TWo, vmem_limit = _pick_tiles(N, Ho, Wo)
    Ho_p, Wo_p = _round_up(Ho, TH), _round_up(Wo, TWo)

    # Crop the rows/cols a stride-3 VALID conv ignores, then zero-pad so the
    # output is an exact multiple of the (TH, TWo) tile.  Both are no-ops for
    # already-aligned shapes; the padded region is cropped after the kernel.
    xc = x[:, :, :3 * Ho, :3 * Wo].astype(jnp.float32)
    pad_h, pad_w = 3 * (Ho_p - Ho), 3 * (Wo_p - Wo)
    if pad_h or pad_w:
        xc = jnp.pad(xc, ((0, 0), (0, 0), (0, pad_h), (0, pad_w)))

    ry, rx, my, mx = _make_band_matrices(TH, TWo)
    grid = (N, Ho_p // TH, Wo_p // TWo)
    steps = N * (Ho_p // TH) * (Wo_p // TWo)

    # Cost estimate for the tiled, separable formulation.
    mxu_flops = steps * (2 * 2 * TH * (3 * TH) * (3 * TWo)      # row combine
                         + 2 * 2 * TH * (3 * TWo) * TWo)        # col combine
    vpu_flops = steps * (2 * (3 * TH) * (3 * TWo) + 4 * TH * TWo)
    bytes_accessed = (N * C * (3 * Ho_p) * (3 * Wo_p) * 4        # input
                      + (2 * TH * 3 * TH + 2 * 3 * TWo * TWo) * 4  # band mats
                      + N * Ho_p * Wo_p * 4)                     # output

    out = pl.pallas_call(
        _sobel_kernel,
        out_shape=jax.ShapeDtypeStruct((N, Ho_p, Wo_p), jnp.float32),
        grid_spec=pltpu.PrefetchScalarGridSpec(
            num_scalar_prefetch=0,
            grid=grid,
            in_specs=[
                # Contiguous NCHW window: 3*TH input rows x 3*TWo input cols.
                pl.BlockSpec((1, C, 3 * TH, 3 * TWo),
                             lambda n, r, c: (n, 0, r, c)),
                # Grid-constant band matrices (small, reused by every tile).
                # TODO(synk): pipeline_mode=pl.Buffered(1) once validated.
                pl.BlockSpec((TH, 3 * TH), lambda n, r, c: (0, 0)),
                pl.BlockSpec((TH, 3 * TH), lambda n, r, c: (0, 0)),
                pl.BlockSpec((3 * TWo, TWo), lambda n, r, c: (0, 0)),
                pl.BlockSpec((3 * TWo, TWo), lambda n, r, c: (0, 0)),
                # [ybias, xbias] scalars in SMEM.
                pl.BlockSpec(memory_space=pltpu.MemorySpace.SMEM),
            ],
            out_specs=pl.BlockSpec((1, TH, TWo), lambda n, r, c: (n, r, c)),
        ),
        compiler_params=pltpu.CompilerParams(
            dimension_semantics=("parallel", "parallel", "parallel"),
            vmem_limit_bytes=vmem_limit),
        cost_estimate=pl.CostEstimate(
            flops=int(mxu_flops + vpu_flops),
            transcendentals=int(steps * TH * TWo),
            bytes_accessed=int(bytes_accessed)),
    )(xc, ry, rx, my, mx, bias)

    out = out[:, :Ho, :Wo]
    # torch .repeat(1, 3, 1, 1): broadcast the single magnitude channel to 3.
    return jnp.broadcast_to(out[:, None, :, :], (N, 3, Ho, Wo))


def _sobel_reference(x, ybias, xbias):
    """Pure-JAX reference (lax conv) matching the PyTorch forward."""
    fy = jnp.array([[-1., -2., -1.], [0., 0., 0.], [1., 2., 1.]], jnp.float32)
    fx = jnp.array([[-1., 0., 1.], [-2., 0., 2.], [-1., 0., 1.]], jnp.float32)
    wy = jnp.broadcast_to(fy, (1, 3, 3, 3))   # (O=1, I=3, kh, kw)
    wx = jnp.broadcast_to(fx, (1, 3, 3, 3))
    dn = jax.lax.conv_dimension_numbers(x.shape, wy.shape, ("NCHW", "OIHW", "NCHW"))
    o1 = jax.lax.conv_general_dilated(x, wy, (3, 3), "VALID", dimension_numbers=dn) + ybias
    o2 = jax.lax.conv_general_dilated(x, wx, (3, 3), "VALID", dimension_numbers=dn) + xbias
    o = jnp.sqrt(jnp.abs(o1 * o1 + o2 * o2))
    return jnp.tile(o, (1, 3, 1, 1))


if __name__ == "__main__":
    key = jax.random.PRNGKey(0)
    kx, kb = jax.random.split(key)

    # SOBEL input: NCHW with 3 channels; spatial divisible by the stride 3.
    N, C, H, W = 2, 3, 48, 48
    x = jax.random.normal(kx, (N, C, H, W), dtype=jnp.float32)

    # xbias / ybias are nn.Parameter(torch.Tensor(1)) -> uninitialized in
    # PyTorch; initialize deterministically here.
    b = jax.random.normal(kb, (2,), dtype=jnp.float32) * 0.1
    ybias, xbias = float(b[0]), float(b[1])
    bias = jnp.array([ybias, xbias], dtype=jnp.float32)

    out = jax.jit(sobel_forward)(x, bias)
    out = jax.block_until_ready(out)

    ref = _sobel_reference(x, ybias, xbias)
    assert out.shape == (N, 3, H // 3, W // 3)
    assert jnp.allclose(out, ref, atol=1e-3, rtol=1e-4), "mismatch vs reference"

    print("KERNEL_OK")
</pallas_src>

<mosaic_0001>
module attributes {stable_mosaic.version = 11 : i64} {
  func.func @_sobel_kernel(%arg0: i32, %arg1: i32, %arg2: i32, %arg3: memref<1x3x48x384xf32, #tpu.memory_space<vmem>>, %arg4: memref<16x48xf32, #tpu.memory_space<vmem>>, %arg5: memref<16x48xf32, #tpu.memory_space<vmem>>, %arg6: memref<384x128xf32, #tpu.memory_space<vmem>>, %arg7: memref<384x128xf32, #tpu.memory_space<vmem>>, %arg8: memref<2xf32, #tpu.memory_space<smem>>, %arg9: memref<1x16x128xf32, #tpu.memory_space<vmem>>) attributes {dimension_semantics = [#tpu.dimension_semantics<parallel>, #tpu.dimension_semantics<parallel>, #tpu.dimension_semantics<parallel>], iteration_bounds = array<i64: 2, 1, 1>, scalar_prefetch = 0 : i64, scratch_operands = 0 : i64, tpu.core_type = #tpu.core_type<tc>, window_params = [{transform_indices = @transform_0, window_bounds = array<i64: 1, 3, 48, 384>}, {pipeline_mode = #tpu.pipeline_mode<synchronous>, transform_indices = @transform_1, window_bounds = array<i64: 16, 48>}, {pipeline_mode = #tpu.pipeline_mode<synchronous>, transform_indices = @transform_2, window_bounds = array<i64: 16, 48>}, {pipeline_mode = #tpu.pipeline_mode<synchronous>, transform_indices = @transform_3, window_bounds = array<i64: 384, 128>}, {pipeline_mode = #tpu.pipeline_mode<synchronous>, transform_indices = @transform_4, window_bounds = array<i64: 384, 128>}, {transform_indices = @transform_5, window_bounds = array<i64: 2>}, {transform_indices = @transform_6, window_bounds = array<i64: 1, 16, 128>}]} {
    %c0 = arith.constant 0 : index
    %c0_0 = arith.constant 0 : index
    %c0_1 = arith.constant 0 : index
    %c0_2 = arith.constant 0 : index
    %0 = vector.load %arg3[%c0, %c0_0, %c0_1, %c0_2] : memref<1x3x48x384xf32, #tpu.memory_space<vmem>>, vector<1x1x48x384xf32>
    %1 = vector.shape_cast %0 : vector<1x1x48x384xf32> to vector<48x384xf32>
    %c0_3 = arith.constant 0 : index
    %c1 = arith.constant 1 : index
    %c0_4 = arith.constant 0 : index
    %c0_5 = arith.constant 0 : index
    %2 = vector.load %arg3[%c0_3, %c1, %c0_4, %c0_5] : memref<1x3x48x384xf32, #tpu.memory_space<vmem>>, vector<1x1x48x384xf32>
    %3 = vector.shape_cast %2 : vector<1x1x48x384xf32> to vector<48x384xf32>
    %4 = arith.addf %1, %3 : vector<48x384xf32>
    %c0_6 = arith.constant 0 : index
    %c2 = arith.constant 2 : index
    %c0_7 = arith.constant 0 : index
    %c0_8 = arith.constant 0 : index
    %5 = vector.load %arg3[%c0_6, %c2, %c0_7, %c0_8] : memref<1x3x48x384xf32, #tpu.memory_space<vmem>>, vector<1x1x48x384xf32>
    %6 = vector.shape_cast %5 : vector<1x1x48x384xf32> to vector<48x384xf32>
    %7 = arith.addf %4, %6 : vector<48x384xf32>
    %c0_9 = arith.constant 0 : index
    %c0_10 = arith.constant 0 : index
    %8 = vector.load %arg4[%c0_9, %c0_10] : memref<16x48xf32, #tpu.memory_space<vmem>>, vector<16x48xf32>
    %cst = arith.constant dense<0.000000e+00> : vector<16x384xf32>
    %9 = tpu.matmul %8, %7, %cst {dimension_numbers = #tpu.dot_dimension_numbers<[1], [0], [0], [1], [0, 0, 1, 1], [], []>} : vector<16x48xf32>, vector<48x384xf32>, vector<16x384xf32> -> vector<16x384xf32>
    %c0_11 = arith.constant 0 : index
    %c0_12 = arith.constant 0 : index
    %10 = vector.load %arg5[%c0_11, %c0_12] : memref<16x48xf32, #tpu.memory_space<vmem>>, vector<16x48xf32>
    %cst_13 = arith.constant dense<0.000000e+00> : vector<16x384xf32>
    %11 = tpu.matmul %10, %7, %cst_13 {dimension_numbers = #tpu.dot_dimension_numbers<[1], [0], [0], [1], [0, 0, 1, 1], [], []>} : vector<16x48xf32>, vector<48x384xf32>, vector<16x384xf32> -> vector<16x384xf32>
    %c0_14 = arith.constant 0 : index
    %c0_15 = arith.constant 0 : index
    %12 = vector.load %arg6[%c0_14, %c0_15] : memref<384x128xf32, #tpu.memory_space<vmem>>, vector<384x128xf32>
    %cst_16 = arith.constant dense<0.000000e+00> : vector<16x128xf32>
    %13 = tpu.matmul %9, %12, %cst_16 {dimension_numbers = #tpu.dot_dimension_numbers<[1], [0], [0], [1], [0, 0, 1, 1], [], []>} : vector<16x384xf32>, vector<384x128xf32>, vector<16x128xf32> -> vector<16x128xf32>
    %c0_17 = arith.constant 0 : index
    %14 = memref.load %arg8[%c0_17] : memref<2xf32, #tpu.memory_space<smem>>
    %15 = vector.broadcast %14 : f32 to vector<16x128xf32>
    %16 = arith.addf %13, %15 : vector<16x128xf32>
    %c0_18 = arith.constant 0 : index
    %c0_19 = arith.constant 0 : index
    %17 = vector.load %arg7[%c0_18, %c0_19] : memref<384x128xf32, #tpu.memory_space<vmem>>, vector<384x128xf32>
    %cst_20 = arith.constant dense<0.000000e+00> : vector<16x128xf32>
    %18 = tpu.matmul %11, %17, %cst_20 {dimension_numbers = #tpu.dot_dimension_numbers<[1], [0], [0], [1], [0, 0, 1, 1], [], []>} : vector<16x384xf32>, vector<384x128xf32>, vector<16x128xf32> -> vector<16x128xf32>
    %c1_21 = arith.constant 1 : index
    %19 = memref.load %arg8[%c1_21] : memref<2xf32, #tpu.memory_space<smem>>
    %20 = vector.broadcast %19 : f32 to vector<16x128xf32>
    %21 = arith.addf %18, %20 : vector<16x128xf32>
    %22 = arith.mulf %16, %16 : vector<16x128xf32>
    %23 = arith.mulf %21, %21 : vector<16x128xf32>
    %24 = arith.addf %22, %23 : vector<16x128xf32>
    %25 = math.sqrt %24 : vector<16x128xf32>
    %c0_22 = arith.constant 0 : index
    %c0_23 = arith.constant 0 : index
    %c0_24 = arith.constant 0 : index
    %26 = vector.load %arg9[%c0_22, %c0_23, %c0_24] : memref<1x16x128xf32, #tpu.memory_space<vmem>>, vector<1x16x128xf32>
    %27 = vector.shape_cast %26 : vector<1x16x128xf32> to vector<16x128xf32>
    %28 = vector.shape_cast %25 : vector<16x128xf32> to vector<1x16x128xf32>
    tpu.vector_store %arg9[%c0_22, %c0_23, %c0_24], %28 {strides = array<i32>} : memref<1x16x128xf32, #tpu.memory_space<vmem>>, vector<1x16x128xf32>,
    return
  }
  func.func @transform_0(%arg0: i32, %arg1: i32, %arg2: i32) -> (i32, i32, i32, i32) {
    %c0_i32 = arith.constant 0 : i32
    %c0_i32_0 = arith.constant 0 : i32
    return %arg0, %c0_i32, %arg1, %arg2 : i32, i32, i32, i32
  }
  func.func @transform_1(%arg0: i32, %arg1: i32, %arg2: i32) -> (i32, i32) {
    %c0_i32 = arith.constant 0 : i32
    %c0_i32_0 = arith.constant 0 : i32
    %c0_i32_1 = arith.constant 0 : i32
    return %c0_i32, %c0_i32_0 : i32, i32
  }
  func.func @transform_2(%arg0: i32, %arg1: i32, %arg2: i32) -> (i32, i32) {
    %c0_i32 = arith.constant 0 : i32
    %c0_i32_0 = arith.constant 0 : i32
    %c0_i32_1 = arith.constant 0 : i32
    return %c0_i32, %c0_i32_0 : i32, i32
  }
  func.func @transform_3(%arg0: i32, %arg1: i32, %arg2: i32) -> (i32, i32) {
    %c0_i32 = arith.constant 0 : i32
    %c0_i32_0 = arith.constant 0 : i32
    %c0_i32_1 = arith.constant 0 : i32
    return %c0_i32, %c0_i32_0 : i32, i32
  }
  func.func @transform_4(%arg0: i32, %arg1: i32, %arg2: i32) -> (i32, i32) {
    %c0_i32 = arith.constant 0 : i32
    %c0_i32_0 = arith.constant 0 : i32
    %c0_i32_1 = arith.constant 0 : i32
    return %c0_i32, %c0_i32_0 : i32, i32
  }
  func.func @transform_5(%arg0: i32, %arg1: i32, %arg2: i32) -> i32 {
    %c0_i32 = arith.constant 0 : i32
    %c0_i32_0 = arith.constant 0 : i32
    return %c0_i32 : i32
  }
  func.func @transform_6(%arg0: i32, %arg1: i32, %arg2: i32) -> (i32, i32, i32) {
    %c0_i32 = arith.constant 0 : i32
    return %arg0, %arg1, %arg2 : i32, i32, i32
  }
}

</mosaic_0001>

<bundles_post_ra>
// kernel: sobel_forward.1
= control target key start
LH: loop header
LB: loop body
LE: loop exit
PB: predicated region body
PF: predicated region fallthrough
CT: control target
= control target key end

     0   :  { %11 = vsyncpa [#allocation3], 0  ;;  %s1155_s21 = smov 0   ;;  %s1157_s22 = smov 0   ;;  %s1589_s0 = inlined_call_operand.vmem [shape: f32[2,3,48,384], index: 0, kind: input, shape index: {}]   ;;  %s1590_s1 = inlined_call_operand.vmem [shape: f32[16,48], index: 1, kind: input, shape index: {}]   ;;  %s1591_s2 = inlined_call_operand.vmem [shape: f32[16,48], index: 2, kind: input, shape index: {}]   ;;  %s1592_s3 = inlined_call_operand.vmem [shape: f32[384,128], index: 3, kind: input, shape index: {}]   ;;  %s1593_s4 = inlined_call_operand.vmem [shape: f32[384,128], index: 4, kind: input, shape index: {}]   ;;  %s1594_s5 = inlined_call_operand.vmem [shape: f32[2], index: 5, kind: input, shape index: {}]   ;;  %s1595_s6 = inlined_call_operand.vmem [shape: f32[2,16,128], index: 6, kind: output, shape index: {}]  }
   0x1   :  { %s1159_s23 = smov 0  }
   0x2 LB: > { %s974_s24 = sadd.s32 4294967295, %s1117_s23   ;;  %s36_s25 = sadd.s32 1, %s1113_s22  ;;  %s1117_s23 = sphi %s1159_s23, %s17_s23   ;;  %s1113_s22 = sphi %s1157_s22, %s1597_s22   ;;  %s1109_s21 = sphi %s1155_s21, %s1596_s21  }
   0x3   : > { %p38_p0 = scmp.ge.s32.totalorder %s36_s25, 2  ;;  %p976_p1 = scmp.ge.s32.totalorder %s1117_s23, 1 }
   0x4   : > { %p206_p2 = scmp.lt.s32.totalorder %s1117_s23, 3  ;;  %p1045_p4 = scmp.eq.s32.totalorder %s974_s24, 0 }
   0x5   : > { %s1599_s25 = smov (%p38_p0, %s36_s25), 0  ;;  %s230_s28 = sshll.u32 %s1594_s5, 4  ;;  %s231_s28 = int_to_ptr.vmem [resolvable:$true] %s230_s28 }
   0x6   : > { %p207_p3 = pnand %p976_p1, %p206_p2  ;;  %s1119_s29 = smov [#allocation2]  }
   0x8   : > { %p1041_p5 = pneg %p207_p3  ;;  %262 = sbr.rel (%p207_p3) target bundleno = 353 (0x161), region = 44 }
   0xa   : > { %p1042_p6 = pnand %p1045_p4, %p1041_p5 }
   0xc   : > { %1044 = dma.vmem_to_smem (!%p1042_p6), %s231_s28, 16, %s1119_s29, [#allocation3]  }
   0xd   : > { %1104 = dma.done.wait (%p1045_p4), [#allocation3], 16  }
   0xe   : > { %1106 = vsyncadd (%p1045_p4), [#allocation3], 4294967280 }
   0xf   : > { %269 = sfence }
  0x10   : > { %p312_p7 = scmp.lt.s32.totalorder %s1109_s21, 1  ;;  %vm433_vm0 = vcmask 392192   ;;  %s634_s10 = sld [smem:[#allocation2]] }
  0x11   : > { %s1032_s11 = sld [smem:[#allocation2 + $0x1]] }
  0x12   : > { %s1601_s21 = smov (!%p312_p7, %s1109_s21), 1 }
  0x13   : > { %s1036_s30 = smul.u32 432, %s1601_s21  ;;  %s1035_s12 = sshll.u32 %s1601_s21, 4 }
  0x14   : > { %s337_s15 = scalar_lea.vmem %s1595_s6, %s1035_s12 }
  0x15   : > { %s1183_s9 = scalar_lea.vmem %s1589_s0, %s1036_s30 }
  0x16   : > { %v354_v0 = vld [vmem:[%s1183_s9 + $0x78] sm:$0xff]  ;;  %v999_v1 = vld [vmem:[%s1183_s9 + $0x108] sm:$0xff]  ;;  %v351_v4 = vld [vmem:[%s1183_s9 + $0x60] sm:$0xff] }
  0x17   : > { %v1017_v2 = vld [vmem:[%s1183_s9 + $0x198] sm:$0xff]  ;;  %v391_v3 = vadd.f32 %v999_v1, %v354_v0  ;;  %v996_v5 = vld [vmem:[%s1183_s9 + $0xf0] sm:$0xff]  ;;  %v1014_v6 = vld [vmem:[%s1183_s9 + $0x180] sm:$0xff] }
  0x18   : > { %v388_v7 = vadd.f32 %v996_v5, %v351_v4  ;;  %v355_v8 = vld [vmem:[%s1183_s9 + $0x80] sm:$0xff]  ;;  %v1000_v9 = vld [vmem:[%s1183_s9 + $0x110] sm:$0xff]  ;;  %v348_v13 = vld [vmem:[%s1183_s9 + $0x48] sm:$0xff] }
  0x19   : > { %v1018_v10 = vld [vmem:[%s1183_s9 + $0x1a0] sm:$0xff]  ;;  %v428_v11 = vadd.f32 %v1017_v2, %v391_v3  ;;  %v392_v12 = vadd.f32 %v1000_v9, %v355_v8  ;;  %v993_v14 = vld [vmem:[%s1183_s9 + $0xd8] sm:$0xff]  ;;  %v1011_v15 = vld [vmem:[%s1183_s9 + $0x168] sm:$0xff] }
  0x1a   : > { %v425_v16 = vadd.f32 %v1014_v6, %v388_v7  ;;  %v385_v17 = vadd.f32 %v993_v14, %v348_v13  ;;  %v352_v18 = vld [vmem:[%s1183_s9 + $0x68] sm:$0xff]  ;;  %v997_v19 = vld [vmem:[%s1183_s9 + $0xf8] sm:$0xff]  ;;  %v345_v28 = vld [vmem:[%s1183_s9 + $0x30] sm:$0xff] }
  0x1b   : > { %v1015_v20 = vld [vmem:[%s1183_s9 + $0x188] sm:$0xff]  ;;  %450 = vmatpush.msra.mxu0 %v428_v11  ;;  %v1200_v21 = vadd.f32 %v1018_v10, %v392_v12  ;;  %v389_v22 = vadd.f32 %v997_v19, %v352_v18  ;;  %v1001_v24 = vld [vmem:[%s1183_s9 + $0x118] sm:$0xff]  ;;  %527 = vmatpush.msra.mxu3 %v428_v11  ;;  %v990_v29 = vld [vmem:[%s1183_s9 + $0xc0] sm:$0xff] }
  0x1c   : > { %v356_v23 = vld [vmem:[%s1183_s9 + $0x88] sm:$0xff]  ;;  %v422_v26 = vadd.f32 %v1011_v15, %v385_v17  ;;  %v1008_v30 = vld [vmem:[%s1183_s9 + $0x150] sm:$0xff]  ;;  %v382_v32 = vadd.f32 %v990_v29, %v345_v28  ;;  %v994_v34 = vld [vmem:[%s1183_s9 + $0xe0] sm:$0xff] }
  0x1d   : > { %v1019_v25 = vld [vmem:[%s1183_s9 + $0x1a8] sm:$0xff]  ;;  %v393_v27 = vadd.f32 %v1001_v24, %v356_v23  ;;  %451 = vmatpush.msra.mxu0 %v425_v16  ;;  %473 = vmatpush.msra.mxu1 %v1200_v21  ;;  %v1209_v31 = vadd.f32 %v1015_v20, %v389_v22  ;;  %v349_v33 = vld [vmem:[%s1183_s9 + $0x50] sm:$0xff]  ;;  %v998_v39 = vld [vmem:[%s1183_s9 + $0x100] sm:$0xff] }
  0x1e   : > { %v1012_v35 = vld [vmem:[%s1183_s9 + $0x170] sm:$0xff]  ;;  %v386_v37 = vadd.f32 %v994_v34, %v349_v33  ;;  %528 = vmatpush.msra.mxu3 %v425_v16  ;;  %v419_v41 = vadd.f32 %v1008_v30, %v382_v32  ;;  %v342_v43 = vld [vmem:[%s1183_s9 + $0x18] sm:$0xff]  ;;  %v987_v44 = vld [vmem:[%s1183_s9 + $0xa8] sm:$0xff] }
  0x1f   : > { %v1214_v36 = vadd.f32 %v1019_v25, %v393_v27  ;;  %v353_v38 = vld [vmem:[%s1183_s9 + $0x70] sm:$0xff]  ;;  %452 = vmatpush.msra.mxu0 %v422_v26  ;;  %474 = vmatpush.msra.mxu1 %v1209_v31  ;;  %v1005_v45 = vld [vmem:[%s1183_s9 + $0x138] sm:$0xff]  ;;  %v379_v47 = vadd.f32 %v987_v44, %v342_v43  ;;  %v991_v49 = vld [vmem:[%s1183_s9 + $0xc8] sm:$0xff] }
  0x20   : > { %v1016_v40 = vld [vmem:[%s1183_s9 + $0x190] sm:$0xff]  ;;  %v390_v42 = vadd.f32 %v998_v39, %v353_v38  ;;  %v1224_v46 = vadd.f32 %v1012_v35, %v386_v37  ;;  %v346_v48 = vld [vmem:[%s1183_s9 + $0x38] sm:$0xff]  ;;  %529 = vmatpush.msra.mxu3 %v422_v26  ;;  %v995_v54 = vld [vmem:[%s1183_s9 + $0xe8] sm:$0xff] }
  0x21   : > { %496 = vmatpush.msra.mxu2 %v1214_v36  ;;  %v1009_v50 = vld [vmem:[%s1183_s9 + $0x158] sm:$0xff]  ;;  %453 = vmatpush.msra.mxu0 %v419_v41  ;;  %v383_v52 = vadd.f32 %v991_v49, %v346_v48  ;;  %v416_v56 = vadd.f32 %v1005_v45, %v379_v47  ;;  %v339_v58 = vld [vmem:[%s1183_s9] sm:$0xff]  ;;  %v984_v59 = vld [vmem:[%s1183_s9 + $0x90] sm:$0xff] }
  0x22   : > { %v1229_v51 = vadd.f32 %v1016_v40, %v390_v42  ;;  %v350_v53 = vld [vmem:[%s1183_s9 + $0x58] sm:$0xff]  ;;  %475 = vmatpush.msra.mxu1 %v1224_v46  ;;  %v1002_v60 = vld [vmem:[%s1183_s9 + $0x120] sm:$0xff]  ;;  %530 = vmatpush.msra.mxu3 %v419_v41  ;;  %v376_v62 = vadd.f32 %v984_v59, %v339_v58  ;;  %v988_v0 = vld [vmem:[%s1183_s9 + $0xb0] sm:$0xff] }
  0x23   : > { %v1013_v55 = vld [vmem:[%s1183_s9 + $0x178] sm:$0xff]  ;;  %v387_v57 = vadd.f32 %v995_v54, %v350_v53  ;;  %v420_v61 = vadd.f32 %v1009_v50, %v383_v52  ;;  %v343_v63 = vld [vmem:[%s1183_s9 + $0x20] sm:$0xff]  ;;  %454 = vmatpush.msra.mxu0 %v416_v56  ;;  %v992_v6 = vld [vmem:[%s1183_s9 + $0xd0] sm:$0xff] }
  0x24   : > { %497 = vmatpush.msra.mxu2 %v1229_v51  ;;  %v1006_v1 = vld [vmem:[%s1183_s9 + $0x140] sm:$0xff]  ;;  %v380_v4 = vadd.f32 %v988_v0, %v343_v63  ;;  %531 = vmatpush.msra.mxu3 %v416_v56  ;;  %v413_v8 = vadd.f32 %v1002_v60, %v376_v62  ;;  %v340_v10 = vld [vmem:[%s1183_s9 + $0x8] sm:$0xff]  ;;  %v985_v11 = vld [vmem:[%s1183_s9 + $0x98] sm:$0xff] }
  0x25   : > { %v431_v2 = vld [vmem:[%s1590_s1] sm:$0xff]  ;;  %v424_v3 = vadd.f32 %v1013_v55, %v387_v57  ;;  %476 = vmatpush.msra.mxu1 %v420_v61  ;;  %v1003_v12 = vld [vmem:[%s1183_s9 + $0x128] sm:$0xff]  ;;  %v377_v14 = vadd.f32 %v985_v11, %v340_v10  ;;  %v989_v16 = vld [vmem:[%s1183_s9 + $0xb8] sm:$0xff] }
  0x26   : > { %v347_v5 = vld [vmem:[%s1183_s9 + $0x40] sm:$0xff]  ;;  %v417_v13 = vadd.f32 %v1006_v1, %v380_v4  ;;  %v344_v15 = vld [vmem:[%s1183_s9 + $0x28] sm:$0xff]  ;;  %455 = vmatpush.msra.mxu0 %v413_v8  ;;  %v341_v20 = vld [vmem:[%s1183_s9 + $0x10] sm:$0xff]  ;;  %532 = vmatpush.msra.mxu3 %v413_v8 }
  0x27   : > { %v1010_v7 = vld [vmem:[%s1183_s9 + $0x160] sm:$0xff]  ;;  %v384_v9 = vadd.f32 %v992_v6, %v347_v5  ;;  %498 = vmatpush.msra.mxu2 %v424_v3  ;;  %v1007_v17 = vld [vmem:[%s1183_s9 + $0x148] sm:$0xff]  ;;  %v381_v19 = vadd.f32 %v989_v16, %v344_v15  ;;  %v1004_v23 = vld [vmem:[%s1183_s9 + $0x130] sm:$0xff]  ;;  %1020 = vmatmul.msk.f32.vlgmr.msra.gmra.mxu0 %vm433_vm0, %v431_v2  ;;  %v414_v24 = vadd.f32 %v1003_v12, %v377_v14 }
  0x28   : > { %v986_v22 = vld [vmem:[%s1183_s9 + $0xa0] sm:$0xff]  ;;  %477 = vmatpush.msra.mxu1 %v417_v13  ;;  %550 = vmatpush.msrb.mxu0 %v1200_v21  ;;  %v617_v29 = vld [vmem:[%s1592_s3 + $0xf8] sm:$0xff]  ;;  %v432_v30 = vld [vmem:[%s1590_s1 + $0x8] sm:$0xff] }
  0x29   : > { %v421_v18 = vadd.f32 %v1010_v7, %v384_v9  ;;  %v378_v25 = vadd.f32 %v986_v22, %v341_v20  ;;  %v509_v26 = vld [vmem:[%s1591_s2] sm:$0xff]  ;;  %v418_v27 = vadd.f32 %v1007_v17, %v381_v19  ;;  %v601_v21 = vld [vmem:[%s1592_s3 + $0x78] sm:$0xff]  ;;  %659 = vmatpush.msrb.mxu3 %v617_v29  ;;  %v600_v32 = vld [vmem:[%s1592_s3 + $0x70] sm:$0xff] }
  0x2a   : > { %478 = vmatpush.msra.mxu1 %v414_v24  ;;  %1026 = vmatmul.msk.f32.vlgmr.msra.gmra.mxu3 %vm433_vm0, %v509_v26  ;;  %v599_v33 = vld [vmem:[%s1592_s3 + $0x68] sm:$0xff]  ;;  %v616_v34 = vld [vmem:[%s1592_s3 + $0xf0] sm:$0xff]  ;;  %v598_v35 = vld [vmem:[%s1592_s3 + $0x60] sm:$0xff] }
  0x2b   : > { %499 = vmatpush.msra.mxu2 %v421_v18  ;;  %v415_v28 = vadd.f32 %v1004_v23, %v378_v25  ;;  %1022 = vmatmul.msk.f32.vlgmr.msra.gmra.mxu1 %vm433_vm0, %v431_v2  ;;  %v597_v37 = vld [vmem:[%s1592_s3 + $0x58] sm:$0xff]  ;;  %v614_v38 = vld [vmem:[%s1592_s3 + $0xe0] sm:$0xff]  ;;  %v719_v41 = vld [vmem:[%s1593_s4 + $0x70] sm:$0xff] }
  0x2c   : > { %573 = vmatpush.msrb.mxu1 %v1214_v36  ;;  %551 = vmatpush.msrb.mxu0 %v1209_v31  ;;  %v1284_v31 = vld [vmem:[%s1591_s2 + $0x8] sm:$0xff]  ;;  %v720_v39 = vld [vmem:[%s1593_s4 + $0x78] sm:$0xff]  ;;  %v596_v42 = vld [vmem:[%s1592_s3 + $0x50] sm:$0xff] }
  0x2d   : > { %500 = vmatpush.msra.mxu2 %v418_v27  ;;  %v615_v36 = vld [vmem:[%s1592_s3 + $0xe8] sm:$0xff]  ;;  %660 = vmatpush.msrb.mxu3 %v616_v34  ;;  %v633_v40 = vld [vmem:[%s1592_s3 + $0x178] sm:$0xff]  ;;  %v632_v44 = vld [vmem:[%s1592_s3 + $0x170] sm:$0xff] }
  0x2e   : > { %574 = vmatpush.msrb.mxu1 %v1229_v51  ;;  %552 = vmatpush.msrb.mxu0 %v1224_v46  ;;  %v613_v43 = vld [vmem:[%s1592_s3 + $0xd8] sm:$0xff]  ;;  %v595_v45 = vld [vmem:[%s1592_s3 + $0x48] sm:$0xff]  ;;  %v612_v47 = vld [vmem:[%s1592_s3 + $0xd0] sm:$0xff] }
  0x2f   : > { %501 = vmatpush.msra.mxu2 %v415_v28  ;;  %1021 = vmatmul.msk.f32.gmra.mxu0 %vm433_vm0, %v432_v30  ;;  %v718_v46 = vld [vmem:[%s1593_s4 + $0x68] sm:$0xff]  ;;  %v594_v49 = vld [vmem:[%s1592_s3 + $0x40] sm:$0xff]  ;;  %v593_v52 = vld [vmem:[%s1592_s3 + $0x38] sm:$0xff] }
  0x30   : > { %1024 = vmatmul.msk.f32.vlgmr.msra.gmra.mxu2 %vm433_vm0, %v431_v2  ;;  %575 = vmatpush.msrb.mxu1 %v424_v3  ;;  %v631_v48 = vld [vmem:[%s1592_s3 + $0x168] sm:$0xff]  ;;  %v717_v50 = vld [vmem:[%s1593_s4 + $0x60] sm:$0xff]  ;;  %v716_v55 = vld [vmem:[%s1593_s4 + $0x58] sm:$0xff] }
  0x31   : > { %636 = vmatpush.msrb.mxu2 %v601_v21  ;;  %553 = vmatpush.msrb.mxu0 %v420_v61  ;;  %v611_v51 = vld [vmem:[%s1592_s3 + $0xc8] sm:$0xff]  ;;  %v630_v53 = vld [vmem:[%s1592_s3 + $0x160] sm:$0xff]  ;;  %v592_v56 = vld [vmem:[%s1592_s3 + $0x30] sm:$0xff] }
  0x32   : > { %576 = vmatpush.msrb.mxu1 %v421_v18  ;;  %1027 = vmatmul.msk.f32.gmra.mxu3 %vm433_vm0, %v1284_v31  ;;  %v610_v54 = vld [vmem:[%s1592_s3 + $0xc0] sm:$0xff]  ;;  %v609_v57 = vld [vmem:[%s1592_s3 + $0xb8] sm:$0xff]  ;;  %v591_v59 = vld [vmem:[%s1592_s3 + $0x28] sm:$0xff] }
  0x33   : > { %637 = vmatpush.msrb.mxu2 %v600_v32  ;;  %1023 = vmatmul.msk.f32.gmra.mxu1 %vm433_vm0, %v432_v30  ;;  %v629_v58 = vld [vmem:[%s1592_s3 + $0x158] sm:$0xff]  ;;  %v608_v60 = vld [vmem:[%s1592_s3 + $0xb0] sm:$0xff]  ;;  %v590_v62 = vld [vmem:[%s1592_s3 + $0x20] sm:$0xff] }
  0x34   : > { %554 = vmatpush.msrb.mxu0 %v417_v13  ;;  %577 = vmatpush.msrb.mxu1 %v418_v27  ;;  %v628_v61 = vld [vmem:[%s1592_s3 + $0x150] sm:$0xff]  ;;  %v607_v63 = vld [vmem:[%s1592_s3 + $0xa8] sm:$0xff]  ;;  %v589_v1 = vld [vmem:[%s1592_s3 + $0x18] sm:$0xff] }
  0x35   : > { %638 = vmatpush.msrb.mxu2 %v599_v33  ;;  %661 = vmatpush.msrb.mxu3 %v615_v36  ;;  %v627_v0 = vld [vmem:[%s1592_s3 + $0x148] sm:$0xff]  ;;  %v606_v2 = vld [vmem:[%s1592_s3 + $0xa0] sm:$0xff]  ;;  %v588_v4 = vld [vmem:[%s1592_s3 + $0x10] sm:$0xff] }
  0x36   : > { %555 = vmatpush.msrb.mxu0 %v414_v24  ;;  %578 = vmatpush.msrb.mxu1 %v415_v28  ;;  %v626_v3 = vld [vmem:[%s1592_s3 + $0x140] sm:$0xff]  ;;  %v605_v5 = vld [vmem:[%s1592_s3 + $0x98] sm:$0xff]  ;;  %v587_v7 = vld [vmem:[%s1592_s3 + $0x8] sm:$0xff] }
  0x37   : > { %639 = vmatpush.msrb.mxu2 %v598_v35  ;;  %1028 = vmatmul.msk.f32.vlgmr.msrb.gmra.mxu0 %vm433_vm0, %v509_v26  ;;  %v625_v6 = vld [vmem:[%s1592_s3 + $0x138] sm:$0xff]  ;;  %v604_v8 = vld [vmem:[%s1592_s3 + $0x90] sm:$0xff]  ;;  %v586_v10 = vld [vmem:[%s1592_s3] sm:$0xff] }
  0x38   : > { %1025 = vmatmul.msk.f32.gmra.mxu2 %vm433_vm0, %v432_v30  ;;  %755 = vmatpush.msra.mxu1 %v720_v39  ;;  %v624_v9 = vld [vmem:[%s1592_s3 + $0x130] sm:$0xff]  ;;  %v603_v11 = vld [vmem:[%s1592_s3 + $0x88] sm:$0xff]  ;;  %v736_v12 = vld [vmem:[%s1593_s4 + $0xf8] sm:$0xff] }
  0x39   : > { %640 = vmatpush.msrb.mxu2 %v597_v37  ;;  %662 = vmatpush.msrb.mxu3 %v614_v38  ;;  %v602_v13 = vld [vmem:[%s1592_s3 + $0x80] sm:$0xff]  ;;  %v735_v14 = vld [vmem:[%s1593_s4 + $0xf0] sm:$0xff]  ;;  %v752_v15 = vld [vmem:[%s1593_s4 + $0x178] sm:$0xff] }
  0x3a   : > { %682 = vmatpush.msra.mxu0 %v633_v40  ;;  %756 = vmatpush.msra.mxu1 %v719_v41  ;;  %v734_v16 = vld [vmem:[%s1593_s4 + $0xe8] sm:$0xff]  ;;  %v751_v17 = vld [vmem:[%s1593_s4 + $0x170] sm:$0xff]  ;;  %v733_v18 = vld [vmem:[%s1593_s4 + $0xe0] sm:$0xff] }
  0x3b   : > { %1030 = vmatmul.msk.f32.vlgmr.msrb.gmra.mxu1 %vm433_vm0, %v509_v26  ;;  %641 = vmatpush.msrb.mxu2 %v596_v42  ;;  %v750_v19 = vld [vmem:[%s1593_s4 + $0x168] sm:$0xff]  ;;  %v732_v20 = vld [vmem:[%s1593_s4 + $0xd8] sm:$0xff]  ;;  %v749_v22 = vld [vmem:[%s1593_s4 + $0x160] sm:$0xff] }
  0x3c   : > { %663 = vmatpush.msrb.mxu3 %v613_v43  ;;  %683 = vmatpush.msra.mxu0 %v632_v44  ;;  %v731_v23 = vld [vmem:[%s1593_s4 + $0xd0] sm:$0xff]  ;;  %v748_v24 = vld [vmem:[%s1593_s4 + $0x158] sm:$0xff]  ;;  %v730_v25 = vld [vmem:[%s1593_s4 + $0xc8] sm:$0xff] }
  0x3d   : > { %642 = vmatpush.msrb.mxu2 %v595_v45  ;;  %757 = vmatpush.msra.mxu1 %v718_v46  ;;  %v747_v26 = vld [vmem:[%s1593_s4 + $0x150] sm:$0xff]  ;;  %v623_v27 = vld [vmem:[%s1592_s3 + $0x128] sm:$0xff]  ;;  %v729_v29 = vld [vmem:[%s1593_s4 + $0xc0] sm:$0xff] }
  0x3e   : > { %664 = vmatpush.msrb.mxu3 %v612_v47  ;;  %684 = vmatpush.msra.mxu0 %v631_v48  ;;  %v715_v28 = vld [vmem:[%s1593_s4 + $0x50] sm:$0xff]  ;;  %v746_v21 = vld [vmem:[%s1593_s4 + $0x148] sm:$0xff]  ;;  %v622_v30 = vld [vmem:[%s1592_s3 + $0x120] sm:$0xff] }
  0x3f   : > { %643 = vmatpush.msrb.mxu2 %v594_v49  ;;  %758 = vmatpush.msra.mxu1 %v717_v50  ;;  %v714_v32 = vld [vmem:[%s1593_s4 + $0x48] sm:$0xff]  ;;  %v745_v33 = vld [vmem:[%s1593_s4 + $0x140] sm:$0xff]  ;;  %v621_v34 = vld [vmem:[%s1592_s3 + $0x118] sm:$0xff] }
  0x40   : > { %1029 = vmatmul.msk.f32.gmra.mxu0 %vm433_vm0, %v1284_v31  ;;  %665 = vmatpush.msrb.mxu3 %v611_v51  ;;  %v713_v35 = vld [vmem:[%s1593_s4 + $0x40] sm:$0xff]  ;;  %v727_v36 = vld [vmem:[%s1593_s4 + $0xb0] sm:$0xff]  ;;  %v744_v37 = vld [vmem:[%s1593_s4 + $0x138] sm:$0xff] }
  0x41   : > { %644 = vmatpush.msrb.mxu2 %v593_v52  ;;  %685 = vmatpush.msra.mxu0 %v630_v53  ;;  %v620_v38 = vld [vmem:[%s1592_s3 + $0x110] sm:$0xff]  ;;  %v712_v39 = vld [vmem:[%s1593_s4 + $0x38] sm:$0xff]  ;;  %v726_v40 = vld [vmem:[%s1593_s4 + $0xa8] sm:$0xff] }
  0x42   : > { %666 = vmatpush.msrb.mxu3 %v610_v54  ;;  %759 = vmatpush.msra.mxu1 %v716_v55  ;;  %v743_v41 = vld [vmem:[%s1593_s4 + $0x130] sm:$0xff]  ;;  %v619_v42 = vld [vmem:[%s1592_s3 + $0x108] sm:$0xff]  ;;  %v725_v44 = vld [vmem:[%s1593_s4 + $0xa0] sm:$0xff] }
  0x43   : > { %1031 = vmatmul.msk.f32.gmra.mxu1 %vm433_vm0, %v1284_v31  ;;  %645 = vmatpush.msrb.mxu2 %v592_v56  ;;  %v728_v31 = vld [vmem:[%s1593_s4 + $0xb8] sm:$0xff]  ;;  %v711_v43 = vld [vmem:[%s1593_s4 + $0x30] sm:$0xff]  ;;  %v742_v45 = vld [vmem:[%s1593_s4 + $0x128] sm:$0xff] }
  0x44   : > { %667 = vmatpush.msrb.mxu3 %v609_v57  ;;  %686 = vmatpush.msra.mxu0 %v629_v58  ;;  %v618_v46 = vld [vmem:[%s1592_s3 + $0x100] sm:$0xff]  ;;  %v710_v47 = vld [vmem:[%s1593_s4 + $0x28] sm:$0xff]  ;;  %v724_v48 = vld [vmem:[%s1593_s4 + $0x98] sm:$0xff] }
  0x45   : > { %646 = vmatpush.msrb.mxu2 %v591_v59  ;;  %760 = vmatpush.msra.mxu1 %v715_v28  ;;  %v741_v49 = vld [vmem:[%s1593_s4 + $0x120] sm:$0xff]  ;;  %v723_v51 = vld [vmem:[%s1593_s4 + $0x90] sm:$0xff]  ;;  %v740_v52 = vld [vmem:[%s1593_s4 + $0x118] sm:$0xff] }
  0x46   : > { %668 = vmatpush.msrb.mxu3 %v608_v60  ;;  %687 = vmatpush.msra.mxu0 %v628_v61  ;;  %v709_v50 = vld [vmem:[%s1593_s4 + $0x20] sm:$0xff]  ;;  %v708_v53 = vld [vmem:[%s1593_s4 + $0x18] sm:$0xff]  ;;  %v722_v54 = vld [vmem:[%s1593_s4 + $0x88] sm:$0xff] }
  0x47   : > { %647 = vmatpush.msrb.mxu2 %v590_v62  ;;  %761 = vmatpush.msra.mxu1 %v714_v32  ;;  %v739_v55 = vld [vmem:[%s1593_s4 + $0x110] sm:$0xff]  ;;  %v721_v57 = vld [vmem:[%s1593_s4 + $0x80] sm:$0xff]  ;;  %v738_v58 = vld [vmem:[%s1593_s4 + $0x108] sm:$0xff] }
  0x48   : > { %669 = vmatpush.msrb.mxu3 %v607_v63  ;;  %688 = vmatpush.msra.mxu0 %v627_v0  ;;  %v707_v56 = vld [vmem:[%s1593_s4 + $0x10] sm:$0xff]  ;;  %v706_v59 = vld [vmem:[%s1593_s4 + $0x8] sm:$0xff]  ;;  %v737_v60 = vld [vmem:[%s1593_s4 + $0x100] sm:$0xff] }
  0x49   : > { %648 = vmatpush.msrb.mxu2 %v589_v1  ;;  %762 = vmatpush.msra.mxu1 %v713_v35  ;;  %v705_v61 = vld [vmem:[%s1593_s4] sm:$0xff] }
  0x4a   : > { %670 = vmatpush.msrb.mxu3 %v606_v2  ;;  %689 = vmatpush.msra.mxu0 %v626_v3 }
  0x4b   : > { %649 = vmatpush.msrb.mxu2 %v588_v4  ;;  %763 = vmatpush.msra.mxu1 %v712_v39 }
  0x4c   : > { %671 = vmatpush.msrb.mxu3 %v605_v5  ;;  %690 = vmatpush.msra.mxu0 %v625_v6 }
  0x4d   : > { %650 = vmatpush.msrb.mxu2 %v587_v7  ;;  %764 = vmatpush.msra.mxu1 %v711_v43 }
  0x4e   : > { %672 = vmatpush.msrb.mxu3 %v604_v8  ;;  %691 = vmatpush.msra.mxu0 %v624_v9 }
  0x4f   : > { %651 = vmatpush.msrb.mxu2 %v586_v10  ;;  %765 = vmatpush.msra.mxu1 %v710_v47 }
  0x50   : > { %673 = vmatpush.msrb.mxu3 %v603_v11  ;;  %692 = vmatpush.msra.mxu0 %v623_v27 }
  0x51   : > { %778 = vmatpush.msra.mxu2 %v736_v12  ;;  %766 = vmatpush.msra.mxu1 %v709_v50  ;;  %v635_v12 = vstv %s634_s10 }
  0x52   : > { %674 = vmatpush.msrb.mxu3 %v602_v13  ;;  %693 = vmatpush.msra.mxu0 %v622_v30 }
  0x53   : > { %779 = vmatpush.msra.mxu2 %v735_v14  ;;  %767 = vmatpush.msra.mxu1 %v708_v53 }
  0x54   : > { %801 = vmatpush.msra.mxu3 %v752_v15  ;;  %694 = vmatpush.msra.mxu0 %v621_v34 }
  0x55   : > { %780 = vmatpush.msra.mxu2 %v734_v16  ;;  %768 = vmatpush.msra.mxu1 %v707_v56  ;;  %v754_v16 = vstv %s1032_s11 }
  0x56   : > { %802 = vmatpush.msra.mxu3 %v751_v17  ;;  %695 = vmatpush.msra.mxu0 %v620_v38 }
  0x57   : > { %781 = vmatpush.msra.mxu2 %v733_v18  ;;  %769 = vmatpush.msra.mxu1 %v706_v59 }
  0x58   : > { %803 = vmatpush.msra.mxu3 %v750_v19  ;;  %696 = vmatpush.msra.mxu0 %v619_v42 }
  0x59   : > { %782 = vmatpush.msra.mxu2 %v732_v20  ;;  %770 = vmatpush.msra.mxu1 %v705_v61 }
  0x5a   : > { %804 = vmatpush.msra.mxu3 %v749_v22  ;;  %697 = vmatpush.msra.mxu0 %v618_v46 }
  0x5b   : > { %783 = vmatpush.msra.mxu2 %v731_v23 }
  0x5c   : > { %805 = vmatpush.msra.mxu3 %v748_v24 }
  0x5d   : > { %784 = vmatpush.msra.mxu2 %v730_v25 }
  0x5e   : > { %806 = vmatpush.msra.mxu3 %v747_v26 }
  0x5f   : > { %785 = vmatpush.msra.mxu2 %v729_v29 }
  0x60   : > { %807 = vmatpush.msra.mxu3 %v746_v21 }
  0x61   : > { %786 = vmatpush.msra.mxu2 %v728_v31 }
  0x62   : > { %808 = vmatpush.msra.mxu3 %v745_v33 }
  0x63   : > { %787 = vmatpush.msra.mxu2 %v727_v36 }
  0x64   : > { %809 = vmatpush.msra.mxu3 %v744_v37 }
  0x65   : > { %788 = vmatpush.msra.mxu2 %v726_v40 }
  0x66   : > { %810 = vmatpush.msra.mxu3 %v743_v41 }
  0x67   : > { %789 = vmatpush.msra.mxu2 %v725_v44 }
  0x68   : > { %811 = vmatpush.msra.mxu3 %v742_v45 }
  0x69   : > { %790 = vmatpush.msra.mxu2 %v724_v48 }
  0x6a   : > { %812 = vmatpush.msra.mxu3 %v741_v49 }
  0x6b   : > { %791 = vmatpush.msra.mxu2 %v723_v51 }
  0x6c   : > { %813 = vmatpush.msra.mxu3 %v740_v52 }
  0x6d   : > { %792 = vmatpush.msra.mxu2 %v722_v54 }
  0x6e   : > { %814 = vmatpush.msra.mxu3 %v739_v55 }
  0x6f   : > { %793 = vmatpush.msra.mxu2 %v721_v57 }
  0x70   : > { %815 = vmatpush.msra.mxu3 %v738_v58 }
  0x72   : > { %816 = vmatpush.msra.mxu3 %v737_v60 }
  0xa4   : > { %v457_v62 = vpop.f32.mrf.mxu0 }
  0xa5   : > { %652 = vmatmul.f32.vlgmr.msrb.gmra.mxu2 %v457_v62 }
  0xa8   : > { %v480_v63 = vpop.f32.mrf.mxu1 }
  0xa9   : > { %675 = vmatmul.f32.vlgmr.msrb.gmra.mxu3 %v480_v63 }
  0xac   : > { %v460_v0 = vpop.f32.mrf.mxu0 }
  0xad   : > { %v534_v1 = vpop.f32.mrf.mxu3  ;;  %655 = vmatmul.f32.gmra.mxu2 %v460_v0 }
  0xae   : > { %771 = vmatmul.f32.vlgmr.msra.gmra.mxu1 %v534_v1 }
  0xb0   : > { %v483_v2 = vpop.f32.mrf.mxu1 }
  0xb1   : > { %678 = vmatmul.f32.gmra.mxu3 %v483_v2 }
  0xb3   : > { %v503_v3 = vpop.f32.mrf.mxu2 }
  0xb4   : > { %698 = vmatmul.f32.vlgmr.msra.gmra.mxu0 %v503_v3  ;;  %v557_v4 = vpop.f32.mrf.mxu0 }
  0xb5   : > { %v537_v5 = vpop.f32.mrf.mxu3  ;;  %794 = vmatmul.f32.vlgmr.msra.gmra.mxu2 %v557_v4 }
  0xb6   : > { %774 = vmatmul.f32.gmra.mxu1 %v537_v5 }
  0xb8   : > { %v580_v6 = vpop.f32.mrf.mxu1 }
  0xb9   : > { %817 = vmatmul.f32.vlgmr.msra.gmra.mxu3 %v580_v6 }
  0xbb   : > { %v506_v7 = vpop.f32.mrf.mxu2 }
  0xbc   : > { %701 = vmatmul.f32.gmra.mxu0 %v506_v7 }
  0xbd   : > { %v560_v8 = vpop.f32.mrf.mxu0 }
  0xbe   : > { %797 = vmatmul.f32.gmra.mxu2 %v560_v8 }
  0xc0   : > { %v583_v9 = vpop.f32.mrf.mxu1 }
  0xc1   : > { %820 = vmatmul.f32.gmra.mxu3 %v583_v9 }
 0x128   : > { %v653_v10 = vpop.f32.mrf.mxu2 }
 0x129   : > { %v654_v15 = vadd.f32 %v653_v10, %v635_v12 }
 0x12b   : > { %v772_v14 = vpop.f32.mrf.mxu1 }
 0x12c   : > { %v676_v11 = vpop.f32.mrf.mxu3  ;;  %v773_v19 = vadd.f32 %v772_v14, %v754_v16 }
 0x12d   : > { %v677_v20 = vadd.f32 %v676_v11, %v654_v15 }
 0x130   : > { %v656_v13 = vpop.f32.mrf.mxu2 }
 0x131   : > { %v699_v18 = vpop.f32.mrf.mxu0  ;;  %v657_v25 = vadd.f32 %v656_v13, %v635_v12 }
 0x132   : > { %v700_v24 = vadd.f32 %v699_v18, %v677_v20 }
 0x133   : > { %v775_v26 = vpop.f32.mrf.mxu1 }
 0x134   : > { %v679_v17 = vpop.f32.mrf.mxu3  ;;  %v776_v29 = vadd.f32 %v775_v26, %v754_v16  ;;  %v824_v21 = vmul.f32 %v700_v24, %v700_v24 }
 0x135   : > { %v680_v30 = vadd.f32 %v679_v17, %v657_v25 }
 0x138   : > { %v795_v22 = vpop.f32.mrf.mxu2 }
 0x139   : > { %v796_v23 = vadd.f32 %v795_v22, %v773_v19  ;;  %v702_v31 = vpop.f32.mrf.mxu0 }
 0x13a   : > { %v703_v36 = vadd.f32 %v702_v31, %v680_v30 }
 0x13c   : > { %v818_v27 = vpop.f32.mrf.mxu3  ;;  %v825_v39 = vmul.f32 %v703_v36, %v703_v36 }
 0x13d   : > { %v819_v28 = vadd.f32 %v818_v27, %v796_v23 }
 0x13f   : > { %v826_v32 = vmul.f32 %v819_v28, %v819_v28 }
 0x141   : > { %v828_v33 = vadd.f32 %v826_v32, %v824_v21  ;;  %v798_v34 = vpop.f32.mrf.mxu2 }
 0x142   : > { %v799_v35 = vadd.f32 %v798_v34, %v776_v29 }
 0x143   : > { %1072 = vrsqrt.f32 %v828_v33  ;;  %vm837_vm1 = vcmp.eq.f32.partialorder %v828_v33, inf  ;;  %v840_v52 = vand.u32 2147483648, %v828_v33  ;;  %vm839_vm2 = vcmp.eq.f32.partialorder %v828_v33, 0.0 }
 0x144   : > { %v821_v37 = vpop.f32.mrf.mxu3 }
 0x145   : > { %v822_v38 = vadd.f32 %v821_v37, %v799_v35 }
 0x147   : > { %v827_v40 = vmul.f32 %v822_v38, %v822_v38 }
 0x149   : > { %v1073_v41 = vpop.eup %1072  ;;  %v829_v42 = vadd.f32 %v827_v40, %v825_v39 }
 0x14a   : > { %v831_v43 = vmul.f32 %v1073_v41, %v828_v33 }
 0x14b   : > { %1074 = vrsqrt.f32 %v829_v42  ;;  %vm849_vm3 = vcmp.eq.f32.partialorder %v829_v42, inf  ;;  %v852_v59 = vand.u32 2147483648, %v829_v42  ;;  %vm851_vm4 = vcmp.eq.f32.partialorder %v829_v42, 0.0 }
 0x14c   : > { %v832_v44 = vmul.f32 %v1073_v41, %v831_v43 }
 0x14e   : > { %v833_v45 = vmul.f32 0.5, %v832_v44 }
 0x150   : > { %v834_v46 = vsub.f32 1.5, %v833_v45 }
 0x151   : > { %v1075_v47 = vpop.eup %1074 }
 0x152   : > { %v835_v48 = vmul.f32 %v1073_v41, %v834_v46  ;;  %v843_v49 = vmul.f32 %v1075_v47, %v829_v42 }
 0x154   : > { %v836_v50 = vmul.f32 %v835_v48, %v828_v33  ;;  %v844_v51 = vmul.f32 %v1075_v47, %v843_v49 }
 0x156   : > { %v838_v53 = vsel %vm837_vm1, %v828_v33, %v836_v50  ;;  %v845_v54 = vmul.f32 0.5, %v844_v51 }
 0x157   : > { %v841_v55 = vsel %vm839_vm2, %v840_v52, %v838_v53 }
 0x158   : > { %854 = vst [vmem:[%s337_s15] sm:$0xff] %v841_v55  ;;  %v846_v56 = vsub.f32 1.5, %v845_v54 }
 0x15a   : > { %v847_v57 = vmul.f32 %v1075_v47, %v846_v56 }
 0x15c   : > { %v848_v58 = vmul.f32 %v847_v57, %v829_v42 }
 0x15e   : > { %v850_v60 = vsel %vm849_vm3, %v829_v42, %v848_v58 }
 0x15f   : > { %v853_v61 = vsel %vm851_vm4, %v852_v59, %v850_v60 }
 0x160   : > { %855 = vst [vmem:[%s337_s15 + $0x8] sm:$0xff] %v853_v61 }
 0x161 PF: > { %s17_s23 = sadd.s32 1, %s1117_s23   ;;  %s1596_s21 = smov %s1113_s22 }
 0x162   : > { %p14_p8 = scmp.ge.s32.totalorder %s17_s23, 4   ;;  %s1597_s22 = smov %s1599_s25 }
 0x164   :  { %16 = sbr.rel (!%p14_p8) target bundleno = 2 (0x2), region = 81 }
 0x169   :  { %892 = vsyncpa [#allocation3], 1 }
 0x16a   :  { %894 = vsyncpa [#allocation3 + $0x1], 1 }

</bundles_post_ra>
